<compile_context>
chip_gen: v7x
topology: tpu7x:2x2x1
jax: 0.10.0
libtpu: 0.0.40
codegen_flags: <defaults>
</compile_context>

<pallas_src>
import functools

import jax
import jax.numpy as jnp
from jax.experimental import pallas as pl
from jax.experimental.pallas import tpu as pltpu


def _round_up(x, m):
    return ((x + m - 1) // m) * m


def _infer_mxu_width():
    """MXU tile width: 256 on v6e/v7x, 128 on older generations."""
    try:
        kind = jax.devices()[0].device_kind.lower()
        if any(v in kind for v in ("v2", "v3", "v4", "v5")):
            return 128
    except Exception:
        pass
    return 256


def _infer_num_tensorcores():
    """v7x has 2 TensorCores per chip; v5e/v6e have 1."""
    try:
        kind = jax.devices()[0].device_kind.lower()
        if "v7" in kind:
            return 2
    except Exception:
        pass
    return 1


# ---------------------------------------------------------------------------
# Kernels
# ---------------------------------------------------------------------------

def _qnetwork_kernel_fused(xu_ref, w1_ref, b1_ref, w2_ref, b2_ref,
                           w3_ref, b3_ref, q_ref):
    # Layer 1 (both heads packed along N): h = relu(xu @ [w1|w4] + [b1|b4])
    h = jnp.dot(xu_ref[...], w1_ref[...],
                preferred_element_type=jnp.float32) + b1_ref[...]
    h = jnp.maximum(h, 0.0)
    # Layer 2: block-diagonal diag(w2, w5) (small H: one lane-filling dot).
    h = jnp.dot(h.astype(w2_ref.dtype), w2_ref[...],
                preferred_element_type=jnp.float32) + b2_ref[...]
    h = jnp.maximum(h, 0.0)
    # Layer 3: lane-dense (2H, 128) weight; col 0 = q1, col 1 = q2.
    q = jnp.dot(h.astype(w3_ref.dtype), w3_ref[...],
                preferred_element_type=jnp.float32) + b3_ref[...]
    q_ref[...] = q.astype(q_ref.dtype)


def _qnetwork_kernel_split(xu_ref, w1_ref, b1_ref, w2_ref, b2_ref,
                           w3_ref, b3_ref, q_ref, *, hidden):
    H = hidden
    # Layer 1 (both heads packed along N).
    h = jnp.dot(xu_ref[...], w1_ref[...],
                preferred_element_type=jnp.float32) + b1_ref[...]
    h = jnp.maximum(h, 0.0).astype(w2_ref.dtype)
    b2 = b2_ref[...]
    # Layer 2 un-fused: two dense (H,H) dots instead of one half-zero (2H,2H).
    h1 = jnp.maximum(
        jnp.dot(h[:, :H], w2_ref[0], preferred_element_type=jnp.float32)
        + b2[:, :H], 0.0)
    h2 = jnp.maximum(
        jnp.dot(h[:, H:], w2_ref[1], preferred_element_type=jnp.float32)
        + b2[:, H:], 0.0)
    # Layer 3: per-head lane-dense (H, 128) weights; col 0 = q1, col 1 = q2.
    q = (jnp.dot(h1.astype(w3_ref.dtype), w3_ref[0],
                 preferred_element_type=jnp.float32)
         + jnp.dot(h2.astype(w3_ref.dtype), w3_ref[1],
                   preferred_element_type=jnp.float32)
         + b3_ref[...])
    q_ref[...] = q.astype(q_ref.dtype)


# ---------------------------------------------------------------------------
# Wrapper
# ---------------------------------------------------------------------------

def qnetwork_forward(state, action, prep_params, *, tb_max=1024):
    """Pallas-backed forward of the twin Q network. Returns (q1, q2), each (B, 1)."""
    w1, b1, w2, b2, w3, b3 = prep_params
    B = state.shape[0]
    din = state.shape[1] + action.shape[1]
    H2 = w1.shape[1]          # 2 * hidden_dim
    H = H2 // 2
    act_dt = w1.dtype         # compute dtype follows the weights

    # Merge state|action once in the wrapper: one input ref, one layer-1 dot.
    xu = jnp.concatenate([state, action], axis=1).astype(act_dt)

    # Batch tiling: multiples of 16 (bf16 sublane packing); as few grid steps
    # as possible (per-step overhead ~0.35us dominates), but at least one tile
    # per TensorCore on v7x so the "parallel" grid axis actually shards.
    B16 = _round_up(B, 16)
    num_cores = _infer_num_tensorcores()
    tb = min(tb_max, _round_up(-(-B16 // num_cores), 16))
    b_pad = _round_up(B16, tb)
    if b_pad != B:
        xu = jnp.pad(xu, ((0, b_pad - B), (0, 0)))
    grid = (b_pad // tb,)

    batch_blk = lambda i: (i, 0)     # streams over batch tiles
    const2 = lambda i: (0, 0)        # weights/biases stay resident across grid
    const3 = lambda i: (0, 0, 0)

    split_l2 = (w2.ndim == 3)
    if split_l2:
        kernel = functools.partial(_qnetwork_kernel_split, hidden=H)
        w2_spec = pl.BlockSpec(w2.shape, const3)
        w3_spec = pl.BlockSpec(w3.shape, const3)
        l2_flops = 2 * 2 * b_pad * H * H
    else:
        kernel = _qnetwork_kernel_fused
        w2_spec = pl.BlockSpec(w2.shape, const2)
        w3_spec = pl.BlockSpec(w3.shape, const2)
        l2_flops = 2 * b_pad * H2 * H2

    flops = 2 * b_pad * din * H2 + l2_flops + 2 * b_pad * H2 * 128
    bytes_weights = (w1.size * w1.dtype.itemsize
                     + w2.size * w2.dtype.itemsize
                     + w3.size * w3.dtype.itemsize
                     + (b1.size + b2.size + b3.size) * 4)
    bytes_accessed = xu.size * xu.dtype.itemsize + bytes_weights + b_pad * 128 * 4

    q = pl.pallas_call(
        kernel,
        out_shape=jax.ShapeDtypeStruct((b_pad, 128), jnp.float32),
        grid=grid,
        in_specs=[
            pl.BlockSpec((tb, din), batch_blk),
            pl.BlockSpec(w1.shape, const2),
            pl.BlockSpec(b1.shape, const2),
            w2_spec,
            pl.BlockSpec(b2.shape, const2),
            w3_spec,
            pl.BlockSpec(b3.shape, const2),
        ],
        out_specs=pl.BlockSpec((tb, 128), batch_blk),
        compiler_params=pltpu.CompilerParams(
            dimension_semantics=("parallel",)),
        cost_estimate=pl.CostEstimate(
            flops=flops, transcendentals=0, bytes_accessed=bytes_accessed),
    )(xu, w1, b1, w2, b2, w3, b3)

    # Lane-dense output: cols 0/1 hold q1/q2, cols 2..127 are zero padding.
    q = q[:B]
    return q[:, 0:1], q[:, 1:2]


# ---------------------------------------------------------------------------
# Parameter construction (mirrors the PyTorch module), plus fusion/packing.
# ---------------------------------------------------------------------------

def _xavier_uniform(key, fan_in, fan_out, gain=1.0):
    # Matches torch.nn.init.xavier_uniform_ semantics (gain=1).
    limit = gain * jnp.sqrt(6.0 / (fan_in + fan_out))
    # Stored as (in_features, out_features) so the kernel does x @ W.
    return jax.random.uniform(key, (fan_in, fan_out), jnp.float32, -limit, limit)


def init_qnetwork_params(key, num_inputs, num_actions, hidden_dim):
    din = num_inputs + num_actions
    keys = jax.random.split(key, 6)
    w1 = _xavier_uniform(keys[0], din, hidden_dim)
    b1 = jnp.zeros((1, hidden_dim), jnp.float32)
    w2 = _xavier_uniform(keys[1], hidden_dim, hidden_dim)
    b2 = jnp.zeros((1, hidden_dim), jnp.float32)
    w3 = _xavier_uniform(keys[2], hidden_dim, 1)
    b3 = jnp.zeros((1, 1), jnp.float32)
    w4 = _xavier_uniform(keys[3], din, hidden_dim)
    b4 = jnp.zeros((1, hidden_dim), jnp.float32)
    w5 = _xavier_uniform(keys[4], hidden_dim, hidden_dim)
    b5 = jnp.zeros((1, hidden_dim), jnp.float32)
    w6 = _xavier_uniform(keys[5], hidden_dim, 1)
    b6 = jnp.zeros((1, 1), jnp.float32)
    return (w1, b1, w2, b2, w3, b3, w4, b4, w5, b5, w6, b6)


def prepare_params(params, *, fuse_l2=None, weight_dtype=jnp.bfloat16):
    """Fuse the twin heads and pack weights for the kernel (once, off hot path).

    fuse_l2=None picks the layer-2 form from the MXU width: fused
    block-diagonal when 2*hidden fits one MXU tile, otherwise split per head.
    weight_dtype=jnp.float32 keeps everything in f32 (exact PyTorch numerics)
    if bf16 divergence is ever observed during SAC training.
    """
    (w1, b1, w2, b2, w3, b3, w4, b4, w5, b5, w6, b6) = params
    H = w2.shape[0]
    if fuse_l2 is None:
        fuse_l2 = (2 * H) <= _infer_mxu_width()

    # Layer 1: pack heads along N -> (din, 2H).
    w1f = jnp.concatenate([w1, w4], axis=1)
    b1f = jnp.concatenate([b1, b4], axis=1)
    b2f = jnp.concatenate([b2, b5], axis=1)

    if fuse_l2:
        # Layer 2: block-diagonal so the heads stay independent.
        w2f = (jnp.zeros((2 * H, 2 * H), jnp.float32)
               .at[:H, :H].set(w2).at[H:, H:].set(w5))
        # Layer 3: lane-dense (2H, 128); col 0 = q1, col 1 = q2.
        w3f = (jnp.zeros((2 * H, 128), jnp.float32)
               .at[:H, 0:1].set(w3).at[H:, 1:2].set(w6))
    else:
        # Layer 2: per-head dense (H, H) stack -> two dots in the kernel.
        w2f = jnp.stack([w2, w5])                                   # (2, H, H)
        # Layer 3: per-head lane-dense (H, 128) stack.
        w3f = jnp.stack([
            jnp.zeros((H, 128), jnp.float32).at[:, 0:1].set(w3),
            jnp.zeros((H, 128), jnp.float32).at[:, 1:2].set(w6)])   # (2, H, 128)

    b3f = (jnp.zeros((1, 128), jnp.float32)
           .at[0, 0].set(b3[0, 0]).at[0, 1].set(b6[0, 0]))

    wt = weight_dtype
    return (w1f.astype(wt), b1f, w2f.astype(wt), b2f, w3f.astype(wt), b3f)


# ---------------------------------------------------------------------------
# References for the self-test.
# ---------------------------------------------------------------------------

def _reference_forward_bf16(state, action, params):
    """Pure-JAX reference mirroring the kernel's bf16 rounding points."""
    (w1, b1, w2, b2, w3, b3, w4, b4, w5, b5, w6, b6) = params
    rbf = lambda x: x.astype(jnp.bfloat16).astype(jnp.float32)
    xu = rbf(jnp.concatenate([state, action], axis=1))

    def head(wa, ba, wb, bb, wc, bc):
        h = jnp.maximum(xu @ rbf(wa) + ba, 0.0)
        h = rbf(h)
        h = jnp.maximum(h @ rbf(wb) + bb, 0.0)
        h = rbf(h)
        return h @ rbf(wc) + bc

    return head(w1, b1, w2, b2, w3, b3), head(w4, b4, w5, b5, w6, b6)


def _reference_forward_f32(state, action, params):
    """Pure f32 reference of the original PyTorch module's math."""
    (w1, b1, w2, b2, w3, b3, w4, b4, w5, b5, w6, b6) = params
    xu = jnp.concatenate([state, action], axis=1)
    x1 = jnp.maximum(xu @ w1 + b1, 0.0)
    x1 = jnp.maximum(x1 @ w2 + b2, 0.0)
    x1 = x1 @ w3 + b3
    x2 = jnp.maximum(xu @ w4 + b4, 0.0)
    x2 = jnp.maximum(x2 @ w5 + b5, 0.0)
    x2 = x2 @ w6 + b6
    return x1, x2


if __name__ == "__main__":
    # Small shapes consistent with the module's forward.
    batch = 2
    num_inputs = 8
    num_actions = 4
    hidden_dim = 32

    key = jax.random.PRNGKey(0)
    k_state, k_action, k_params = jax.random.split(key, 3)

    state = jax.random.normal(k_state, (batch, num_inputs), jnp.float32)
    action = jax.random.normal(k_action, (batch, num_actions), jnp.float32)

    raw_params = init_qnetwork_params(k_params, num_inputs, num_actions, hidden_dim)

    # Fused layer-2 path (what small hidden dims use).
    prep_fused = prepare_params(raw_params, fuse_l2=True)
    q1, q2 = qnetwork_forward(state, action, prep_fused)
    jax.block_until_ready((q1, q2))
    assert q1.shape == (batch, 1) and q2.shape == (batch, 1)

    # Split layer-2 path (what large hidden dims use); exercised here for coverage.
    prep_split = prepare_params(raw_params, fuse_l2=False)
    s1, s2 = qnetwork_forward(state, action, prep_split)
    jax.block_until_ready((s1, s2))
    assert s1.shape == (batch, 1) and s2.shape == (batch, 1)

    # Tight check against a reference with identical bf16 rounding.
    r1, r2 = _reference_forward_bf16(state, action, raw_params)
    assert jnp.allclose(q1, r1, atol=1e-3, rtol=1e-3)
    assert jnp.allclose(q2, r2, atol=1e-3, rtol=1e-3)
    assert jnp.allclose(s1, r1, atol=1e-3, rtol=1e-3)
    assert jnp.allclose(s2, r2, atol=1e-3, rtol=1e-3)

    # Loose check against the original f32 semantics (bf16 weight quantization).
    f1, f2 = _reference_forward_f32(state, action, raw_params)
    assert jnp.allclose(q1, f1, atol=5e-2, rtol=5e-2)
    assert jnp.allclose(q2, f2, atol=5e-2, rtol=5e-2)

    print("KERNEL_OK")
</pallas_src>

<mosaic_0001>
module attributes {stable_mosaic.version = 11 : i64} {
  func.func @_qnetwork_kernel_fused(%arg0: i32, %arg1: memref<16x12xbf16, #tpu.memory_space<vmem>>, %arg2: memref<12x64xbf16, #tpu.memory_space<vmem>>, %arg3: memref<1x64xf32, #tpu.memory_space<vmem>>, %arg4: memref<64x64xbf16, #tpu.memory_space<vmem>>, %arg5: memref<1x64xf32, #tpu.memory_space<vmem>>, %arg6: memref<64x128xbf16, #tpu.memory_space<vmem>>, %arg7: memref<1x128xf32, #tpu.memory_space<vmem>>, %arg8: memref<16x128xf32, #tpu.memory_space<vmem>>) attributes {dimension_semantics = [#tpu.dimension_semantics<parallel>], iteration_bounds = array<i64: 1>, scalar_prefetch = 0 : i64, scratch_operands = 0 : i64, tpu.core_type = #tpu.core_type<tc>, window_params = [{transform_indices = @transform_0, window_bounds = array<i64: 16, 12>}, {pipeline_mode = #tpu.pipeline_mode<synchronous>, transform_indices = @transform_1, window_bounds = array<i64: 12, 64>}, {pipeline_mode = #tpu.pipeline_mode<synchronous>, transform_indices = @transform_2, window_bounds = array<i64: 1, 64>}, {pipeline_mode = #tpu.pipeline_mode<synchronous>, transform_indices = @transform_3, window_bounds = array<i64: 64, 64>}, {pipeline_mode = #tpu.pipeline_mode<synchronous>, transform_indices = @transform_4, window_bounds = array<i64: 1, 64>}, {pipeline_mode = #tpu.pipeline_mode<synchronous>, transform_indices = @transform_5, window_bounds = array<i64: 64, 128>}, {pipeline_mode = #tpu.pipeline_mode<synchronous>, transform_indices = @transform_6, window_bounds = array<i64: 1, 128>}, {transform_indices = @transform_7, window_bounds = array<i64: 16, 128>}]} {
    %c0 = arith.constant 0 : index
    %c0_0 = arith.constant 0 : index
    %0 = vector.load %arg1[%c0, %c0_0] : memref<16x12xbf16, #tpu.memory_space<vmem>>, vector<16x12xbf16>
    %c0_1 = arith.constant 0 : index
    %c0_2 = arith.constant 0 : index
    %1 = vector.load %arg2[%c0_1, %c0_2] : memref<12x64xbf16, #tpu.memory_space<vmem>>, vector<12x64xbf16>
    %cst = arith.constant dense<0.000000e+00> : vector<16x64xf32>
    %2 = tpu.matmul %0, %1, %cst {dimension_numbers = #tpu.dot_dimension_numbers<[1], [0], [0], [1], [0, 0, 1, 1], [], []>} : vector<16x12xbf16>, vector<12x64xbf16>, vector<16x64xf32> -> vector<16x64xf32>
    %c0_3 = arith.constant 0 : index
    %c0_4 = arith.constant 0 : index
    %3 = vector.load %arg3[%c0_3, %c0_4] : memref<1x64xf32, #tpu.memory_space<vmem>>, vector<1x64xf32>
    %4 = vector.broadcast %3 : vector<1x64xf32> to vector<16x64xf32>
    %5 = arith.addf %2, %4 : vector<16x64xf32>
    %cst_5 = arith.constant 0.000000e+00 : f32
    %6 = vector.broadcast %cst_5 : f32 to vector<16x64xf32>
    %7 = arith.maximumf %5, %6 : vector<16x64xf32>
    %8 = arith.truncf %7 : vector<16x64xf32> to vector<16x64xbf16>
    %c0_6 = arith.constant 0 : index
    %c0_7 = arith.constant 0 : index
    %9 = vector.load %arg4[%c0_6, %c0_7] : memref<64x64xbf16, #tpu.memory_space<vmem>>, vector<64x64xbf16>
    %cst_8 = arith.constant dense<0.000000e+00> : vector<16x64xf32>
    %10 = tpu.matmul %8, %9, %cst_8 {dimension_numbers = #tpu.dot_dimension_numbers<[1], [0], [0], [1], [0, 0, 1, 1], [], []>} : vector<16x64xbf16>, vector<64x64xbf16>, vector<16x64xf32> -> vector<16x64xf32>
    %c0_9 = arith.constant 0 : index
    %c0_10 = arith.constant 0 : index
    %11 = vector.load %arg5[%c0_9, %c0_10] : memref<1x64xf32, #tpu.memory_space<vmem>>, vector<1x64xf32>
    %12 = vector.broadcast %11 : vector<1x64xf32> to vector<16x64xf32>
    %13 = arith.addf %10, %12 : vector<16x64xf32>
    %cst_11 = arith.constant 0.000000e+00 : f32
    %14 = vector.broadcast %cst_11 : f32 to vector<16x64xf32>
    %15 = arith.maximumf %13, %14 : vector<16x64xf32>
    %16 = arith.truncf %15 : vector<16x64xf32> to vector<16x64xbf16>
    %c0_12 = arith.constant 0 : index
    %c0_13 = arith.constant 0 : index
    %17 = vector.load %arg6[%c0_12, %c0_13] : memref<64x128xbf16, #tpu.memory_space<vmem>>, vector<64x128xbf16>
    %cst_14 = arith.constant dense<0.000000e+00> : vector<16x128xf32>
    %18 = tpu.matmul %16, %17, %cst_14 {dimension_numbers = #tpu.dot_dimension_numbers<[1], [0], [0], [1], [0, 0, 1, 1], [], []>} : vector<16x64xbf16>, vector<64x128xbf16>, vector<16x128xf32> -> vector<16x128xf32>
    %c0_15 = arith.constant 0 : index
    %c0_16 = arith.constant 0 : index
    %19 = vector.load %arg7[%c0_15, %c0_16] : memref<1x128xf32, #tpu.memory_space<vmem>>, vector<1x128xf32>
    %20 = vector.broadcast %19 : vector<1x128xf32> to vector<16x128xf32>
    %21 = arith.addf %18, %20 : vector<16x128xf32>
    %c0_17 = arith.constant 0 : index
    %c0_18 = arith.constant 0 : index
    %22 = vector.load %arg8[%c0_17, %c0_18] : memref<16x128xf32, #tpu.memory_space<vmem>>, vector<16x128xf32>
    tpu.vector_store %arg8[%c0_17, %c0_18], %21 {strides = array<i32>} : memref<16x128xf32, #tpu.memory_space<vmem>>, vector<16x128xf32>,
    return
  }
  func.func @transform_0(%arg0: i32) -> (i32, i32) {
    %c0_i32 = arith.constant 0 : i32
    %c0_i32_0 = arith.constant 0 : i32
    return %arg0, %c0_i32 : i32, i32
  }
  func.func @transform_1(%arg0: i32) -> (i32, i32) {
    %c0_i32 = arith.constant 0 : i32
    %c0_i32_0 = arith.constant 0 : i32
    %c0_i32_1 = arith.constant 0 : i32
    return %c0_i32, %c0_i32_0 : i32, i32
  }
  func.func @transform_2(%arg0: i32) -> (i32, i32) {
    %c0_i32 = arith.constant 0 : i32
    %c0_i32_0 = arith.constant 0 : i32
    %c0_i32_1 = arith.constant 0 : i32
    return %c0_i32, %c0_i32_0 : i32, i32
  }
  func.func @transform_3(%arg0: i32) -> (i32, i32) {
    %c0_i32 = arith.constant 0 : i32
    %c0_i32_0 = arith.constant 0 : i32
    %c0_i32_1 = arith.constant 0 : i32
    return %c0_i32, %c0_i32_0 : i32, i32
  }
  func.func @transform_4(%arg0: i32) -> (i32, i32) {
    %c0_i32 = arith.constant 0 : i32
    %c0_i32_0 = arith.constant 0 : i32
    %c0_i32_1 = arith.constant 0 : i32
    return %c0_i32, %c0_i32_0 : i32, i32
  }
  func.func @transform_5(%arg0: i32) -> (i32, i32) {
    %c0_i32 = arith.constant 0 : i32
    %c0_i32_0 = arith.constant 0 : i32
    %c0_i32_1 = arith.constant 0 : i32
    return %c0_i32, %c0_i32_0 : i32, i32
  }
  func.func @transform_6(%arg0: i32) -> (i32, i32) {
    %c0_i32 = arith.constant 0 : i32
    %c0_i32_0 = arith.constant 0 : i32
    %c0_i32_1 = arith.constant 0 : i32
    return %c0_i32, %c0_i32_0 : i32, i32
  }
  func.func @transform_7(%arg0: i32) -> (i32, i32) {
    %c0_i32 = arith.constant 0 : i32
    %c0_i32_0 = arith.constant 0 : i32
    return %arg0, %c0_i32 : i32, i32
  }
}

</mosaic_0001>

<bundles_post_ra>
// kernel: tpu_custom_call.1
= control target key start
LH: loop header
LB: loop body
LE: loop exit
PB: predicated region body
PF: predicated region fallthrough
CT: control target
= control target key end

     0   :  { %12 = vsyncpa [#allocation3], 0  ;;  %s695_s0 = inlined_call_operand.hbm [shape: bf16[16,12], index: 0, kind: input, shape index: {}]   ;;  %s696_s1 = inlined_call_operand.hbm [shape: bf16[12,64], index: 1, kind: input, shape index: {}]   ;;  %s697_s2 = inlined_call_operand.vmem [shape: f32[1,64], index: 2, kind: input, shape index: {}]   ;;  %s698_s3 = inlined_call_operand.hbm [shape: bf16[64,64], index: 3, kind: input, shape index: {}]   ;;  %s699_s4 = inlined_call_operand.vmem [shape: f32[1,64], index: 4, kind: input, shape index: {}]   ;;  %s700_s5 = inlined_call_operand.hbm [shape: bf16[64,128], index: 5, kind: input, shape index: {}]   ;;  %s701_s6 = inlined_call_operand.vmem [shape: f32[1,128], index: 6, kind: input, shape index: {}]   ;;  %s702_s7 = inlined_call_operand.hbm [shape: f32[16,128], index: 7, kind: output, shape index: {}]  }
   0x1   :  { %13 = vsyncpa [#allocation6], 0 }
   0x2   :  { %14 = vsyncpa [#allocation9], 0 }
   0x3   :  { %15 = vsyncpa [#allocation4], 0  ;;  %s544_s24 = smov [#allocation5]   ;;  %s545_s26 = smov [#allocation2]  }
   0x4   :  { %s33_s25 = sshll.u32 %s544_s24, 4  ;;  %s21_s27 = sshll.u32 %s545_s26, 4  ;;  %s34_s25 = int_to_ptr.vmem [resolvable:$true] %s33_s25  ;;  %s595_s27 = int_to_ptr.vmem [resolvable:$true] %s21_s27 }
   0x5   :  { %s426_s30 = scalar_lea.hbm %s696_s1, 128 }
   0x6   :  { %p427_p0 = scmp.ne.s32.totalorder %s696_s1, %s426_s30  ;;  %p430_p1 = scmp.lt.u32.totalorder %s426_s30, %s696_s1 }
   0x8   :  { %p432_p2 = pnand %p430_p1, %p427_p0 }
   0xa   :  { %435 = shalt.err (!%p432_p2)
}
   0xb   :  { %s436_s12 = scalar_lea.vmem %s34_s25, 128  ;;  %p441_p4 = scmp.lt.s32.totalorder %s34_s25, %s34_s25 }
   0xc   :  { %p437_p3 = scmp.ne.s32.totalorder %s34_s25, %s436_s12  ;;  %p442_p5 = scmp.lt.s32.totalorder %s436_s12, %s436_s12 }
   0xe   :  { %p443_p6 = por %p442_p5, %p441_p4 }
  0x10   :  { %p444_p7 = pnand %p443_p6, %p437_p3 }
  0x12   :  { %447 = shalt.err (!%p444_p7)
}
  0x13   :  { %s546_s13 = smov 64   ;;  %s547_s14 = smov 4  }
  0x14   :  { %39 = dma.hbm_to_vmem [thread:$0]  %s696_s1, 128, %s34_s25, [#allocation6], %s546_s13, %s546_s13, %s547_s14  }
  0x15   :  { %s448_s19 = scalar_lea.hbm %s695_s0, 128 }
  0x16   :  { %p449_p8 = scmp.ne.s32.totalorder %s695_s0, %s448_s19  ;;  %p452_p9 = scmp.lt.u32.totalorder %s448_s19, %s695_s0 }
  0x18   :  { %p454_p10 = pnand %p452_p9, %p449_p8 }
  0x1a   :  { %457 = shalt.err (!%p454_p10)
}
  0x1b   :  { %s458_s24 = scalar_lea.vmem %s595_s27, 128  ;;  %p463_p12 = scmp.lt.s32.totalorder %s595_s27, %s595_s27 }
  0x1c   :  { %p459_p11 = scmp.ne.s32.totalorder %s595_s27, %s458_s24  ;;  %p464_p13 = scmp.lt.s32.totalorder %s458_s24, %s458_s24 }
  0x1e   :  { %p465_p0 = por %p464_p13, %p463_p12 }
  0x20   :  { %p466_p1 = pnand %p465_p0, %p459_p11 }
  0x22   :  { %469 = shalt.err (!%p466_p1)
}
  0x23   :  { %27 = dma.hbm_to_vmem [thread:$0]  %s695_s0, 128, %s595_s27, [#allocation3], %s546_s13, %s546_s13, %s547_s14  }
  0x24   :  { %s548_s26 = smov [#allocation7]   ;;  %s549_s29 = smov [#allocation8]  }
  0x25   :  { %s47_s28 = sshll.u32 %s548_s26, 4  ;;  %s61_s30 = sshll.u32 %s549_s29, 4  ;;  %s48_s28 = int_to_ptr.vmem [resolvable:$true] %s47_s28  ;;  %s632_s30 = int_to_ptr.vmem [resolvable:$true] %s61_s30 }
  0x26   :  { %s470_s10 = scalar_lea.hbm %s698_s3, 512 }
  0x27   :  { %p471_p2 = scmp.ne.s32.totalorder %s698_s3, %s470_s10  ;;  %p474_p3 = scmp.lt.u32.totalorder %s470_s10, %s698_s3 }
  0x29   :  { %p476_p4 = pnand %p474_p3, %p471_p2 }
  0x2b   :  { %479 = shalt.err (!%p476_p4)
}
  0x2c   :  { %s480_s0 = scalar_lea.vmem %s48_s28, 512  ;;  %p485_p6 = scmp.lt.s32.totalorder %s48_s28, %s48_s28 }
  0x2d   :  { %p481_p5 = scmp.ne.s32.totalorder %s48_s28, %s480_s0  ;;  %p486_p7 = scmp.lt.s32.totalorder %s480_s0, %s480_s0 }
  0x2f   :  { %p487_p8 = por %p486_p7, %p485_p6 }
  0x31   :  { %p488_p9 = pnand %p487_p8, %p481_p5 }
  0x33   :  { %491 = shalt.err (!%p488_p9)
}
  0x34   :  { %53 = dma.hbm_to_vmem [thread:$0]  %s698_s3, 512, %s48_s28, [#allocation6], %s546_s13, %s546_s13, %s547_s14  }
  0x35   :  { %s492_s20 = scalar_lea.hbm %s700_s5, 512 }
  0x36   :  { %p493_p10 = scmp.ne.s32.totalorder %s700_s5, %s492_s20  ;;  %p496_p11 = scmp.lt.u32.totalorder %s492_s20, %s700_s5 }
  0x38   :  { %p498_p12 = pnand %p496_p11, %p493_p10 }
  0x3a   :  { %501 = shalt.err (!%p498_p12)
}
  0x3b   :  { %s502_s1 = scalar_lea.vmem %s632_s30, 512  ;;  %p507_p0 = scmp.lt.s32.totalorder %s632_s30, %s632_s30 }
  0x3c   :  { %p503_p13 = scmp.ne.s32.totalorder %s632_s30, %s502_s1  ;;  %p508_p1 = scmp.lt.s32.totalorder %s502_s1, %s502_s1 }
  0x3e   :  { %p509_p2 = por %p508_p1, %p507_p0 }
  0x40   :  { %p510_p3 = pnand %p509_p2, %p503_p13 }
  0x42   :  { %513 = shalt.err (!%p510_p3)
}
  0x43   :  { %67 = dma.hbm_to_vmem [thread:$0]  %s700_s5, 512, %s632_s30, [#allocation9], %s546_s13, %s546_s13, %s547_s14  }
  0x44   :  { %536 = dma.done.wait [#allocation3], 128  }
  0x45   :  { %537 = vsyncadd [#allocation3], 4294967168 }
  0x46   :  { %538 = dma.done.wait [#allocation6], 640  }
  0x47   :  { %539 = vsyncadd [#allocation6], 4294966656 }
  0x48   :  { %540 = dma.done.wait [#allocation9], 512  }
  0x49   :  { %541 = vsyncadd [#allocation9], 4294966784  ;;  %v550_v0 = vmov 0.0   ;;  %vm551_vm0 = vmmov 0   ;;  %vm108_vm1 = vcmask 1045504   ;;  %v417_v2 = vld [vmem:[#allocation2] sm:$0xff]  }
  0x4a   :  { %375 = vmatprep.subr.bf16.mxu0 %v550_v0  ;;  %377 = vmatprep.mubr.msk.bf16.mxu0 %vm551_vm0, %v550_v0  ;;  %v416_v1 = vld [vmem:[#allocation5] sm:$0x3f]   ;;  %v418_v4 = vld [vmem:[#allocation7] sm:$0xff]   ;;  %vm104_vm2 = vcmask 97280   ;;  %v419_v5 = vld [vmem:[#allocation7 + $0x8] sm:$0xff]   ;;  %vm195_vm3 = vcmask 523264  }
  0x4b   :  { %381 = vmatprep.subr.bf16.mxu1 %v550_v0  ;;  %389 = vmatprep.mubr.msk.bf16.mxu1 %vm551_vm0, %v550_v0  ;;  %v110_v3 = vsel %vm108_vm1, %v416_v1, 0  ;;  %v420_v6 = vld [vmem:[#allocation7 + $0x10] sm:$0xff]   ;;  %v421_v7 = vld [vmem:[#allocation7 + $0x18] sm:$0xff]   ;;  %v422_v8 = vld [vmem:[#allocation8] sm:$0xff]   ;;  %s552_s29 = smov [#allocation10]  }
  0x4c   :  { %376 = vmatpush3.bf16.msra.mxu0 %v110_v3  ;;  %382 = vmatpush3.bf16.msra.mxu1 %v418_v4  ;;  %v423_v9 = vld [vmem:[#allocation8 + $0x8] sm:$0xff]   ;;  %v347_v10 = vld [vmem:[%s697_s2] ss:$0 sm:$0xff]  ;;  %v425_v21 = vld [vmem:[#allocation8 + $0x18] sm:$0xff]   ;;  %s333_s30 = sshll.u32 %s552_s29, 4  ;;  %s334_s30 = int_to_ptr.vmem [resolvable:$true] %s333_s30 }
  0x4d   :  { %393 = vmatprep.subr.bf16.mxu0 %v550_v0  ;;  %383 = vmatprep.subr.bf16.mxu1 %v550_v0  ;;  %v424_v20 = vld [vmem:[#allocation8 + $0x10] sm:$0xff]   ;;  %p519_p5 = scmp.lt.s32.totalorder %s334_s30, %s334_s30 }
  0x4e   :  { %v351_v22 = vld [vmem:[%s699_s4] ss:$0 sm:$0xff]  ;;  %s514_s4 = scalar_lea.vmem %s334_s30, 256 }
  0x4f   :  { %378 = vmatmul.mubr.msk.bf16.vlgmr.msra.gmra.mrb[0].mxu0 %vm104_vm2, %v417_v2  ;;  %v357_v32 = vld [vmem:[%s701_s6] ss:$0 sm:$0xff]  ;;  %p515_p4 = scmp.ne.s32.totalorder %s334_s30, %s514_s4  ;;  %p520_p6 = scmp.lt.s32.totalorder %s514_s4, %s514_s4 }
  0x50   :  { %401 = vmatprep.mubr.msk.bf16.mxu0 %vm551_vm0, %v550_v0  ;;  %384 = vmatpush3.bf16.msra.mxu1 %v419_v5 }
  0x51   :  { %385 = vmatprep.subr.bf16.mxu1 %v550_v0  ;;  %394 = vmatpush3.bf16.msra.mxu0 %v422_v8  ;;  %p521_p7 = por %p520_p6, %p519_p5 }
  0x52   :  { %395 = vmatprep.subr.bf16.mxu0 %v550_v0 }
  0x53   :  { %p522_p8 = pnand %p521_p7, %p515_p4 }
  0x54   :  { %386 = vmatpush3.bf16.msra.mxu1 %v420_v6 }
  0x55   :  { %387 = vmatprep.subr.bf16.mxu1 %v550_v0  ;;  %396 = vmatpush3.bf16.msra.mxu0 %v423_v9 }
  0x56   :  { %397 = vmatprep.subr.bf16.mxu0 %v550_v0 }
  0x58   :  { %388 = vmatpush3.bf16.msra.mxu1 %v421_v7 }
  0x59   :  { %398 = vmatpush3.bf16.msra.mxu0 %v424_v20 }
  0x5a   :  { %399 = vmatprep.subr.bf16.mxu0 %v550_v0 }
  0x5d   :  { %400 = vmatpush3.bf16.msra.mxu0 %v425_v21 }
 0x122   :  { %v146_v11 = vpop.f32.mrb[0].mxu0 }
 0x123   :  { %v147_v12 = vadd.f32 %v347_v10, %v146_v11  ;;  %v379_v13 = vpop.f32.mrb[1].mxu0 }
 0x124   :  { %v149_v14 = vpop.f32.mrb[2].mxu0 }
 0x125   :  { %v150_v15 = vadd.f32 %v347_v10, %v149_v14  ;;  %v380_v16 = vpop.f32.mrb[3].mxu0  ;;  %v153_v17 = vmax.f32 %v147_v12, 0.0 }
 0x127   :  { %v154_v18 = vmax.f32 %v150_v15, 0.0 }
 0x129   :  { %v155_v19 = vpack.c.bf16 %v154_v18, %v153_v17 }
 0x12b   :  { %390 = vmatmul.mubr.msk.bf16.vlgmr.msra.gmra.mrb[0].mxu1 %vm195_vm3, %v155_v19 }
 0x1fe   :  { %v233_v23 = vpop.f32.mrb[0].mxu1 }
 0x1ff   :  { %v234_v24 = vadd.f32 %v351_v22, %v233_v23  ;;  %v391_v25 = vpop.f32.mrb[1].mxu1 }
 0x200   :  { %v236_v26 = vpop.f32.mrb[2].mxu1 }
 0x201   :  { %v237_v27 = vadd.f32 %v351_v22, %v236_v26  ;;  %v392_v28 = vpop.f32.mrb[3].mxu1  ;;  %v240_v29 = vmax.f32 %v234_v24, 0.0 }
 0x203   :  { %v241_v30 = vmax.f32 %v237_v27, 0.0 }
 0x205   :  { %v242_v31 = vpack.c.bf16 %v241_v30, %v240_v29 }
 0x207   :  { %402 = vmatmul.mubr.msk.bf16.vlgmr.msra.gmra.mrb[4].mxu0 %vm195_vm3, %v242_v31 }
 0x2da   :  { %v319_v33 = vpop.f32.mrb[4].mxu0 }
 0x2db   :  { %v320_v34 = vadd.f32 %v357_v32, %v319_v33  ;;  %v403_v35 = vpop.f32.mrb[5].mxu0 }
 0x2dc   :  { %v322_v36 = vpop.f32.mrb[6].mxu0 }
 0x2dd   :  { %326 = vst [vmem:[#allocation10] sm:$0xff] %v320_v34  ;;  %v323_v37 = vadd.f32 %v357_v32, %v322_v36  ;;  %v404_v38 = vpop.f32.mrb[7].mxu0 }
 0x2df   :  { %327 = vst [vmem:[#allocation10 + $0x8] sm:$0xff] %v323_v37 }
 0x2e0   :  { %525 = shalt.err (!%p522_p8)
}
 0x2e1   :  { %s526_s9 = scalar_lea.hbm %s702_s7, 256 }
 0x2e2   :  { %p527_p9 = scmp.ne.s32.totalorder %s702_s7, %s526_s9  ;;  %p530_p10 = scmp.lt.u32.totalorder %s526_s9, %s702_s7 }
 0x2e4   :  { %p532_p11 = pnand %p530_p10, %p527_p9 }
 0x2e6   :  { %535 = shalt.err (!%p532_p11)
}
 0x2e7   :  { %s553_s16 = smov 128   ;;  %s554_s0 = smov 8  }
 0x2e8   :  { %339 = dma.vmem_to_hbm [thread:$0]  %s334_s30, 256, %s702_s7, [#allocation4], %s553_s16, %s553_s16, %s554_s0  }
 0x2e9   :  { %542 = dma.done.wait [#allocation4], 256  }
 0x2ea   :  { %543 = vsyncadd [#allocation4], 4294967040 }
 0x2eb   :  { %343 = vsyncpa [#allocation3], 1 }
 0x2ec   :  { %344 = vsyncpa [#allocation6], 1 }
 0x2ed   :  { %345 = vsyncpa [#allocation9], 1 }
 0x2ee   :  { %346 = vsyncpa [#allocation4], 1 }

</bundles_post_ra>
